<compile_context>
chip_gen: v6e
topology: v6e:2x2x1
jax: 0.10.0
libtpu: 0.0.40
codegen_flags: <defaults>
</compile_context>

<pallas_src>
import functools

import jax
import jax.numpy as jnp
from jax import lax
from jax.experimental import pallas as pl
from jax.experimental.pallas import tpu as pltpu

NEG_SLOPE = 0.2
BN_EPS = 1e-5
KSIZE, STRIDE, PAD = 4, 2, 1


def _round_up(x, m):
    return (x + m - 1) // m * m


def _tile_m(m):
    """Pick an M tile (multiple of 8) and the padded M."""
    tm = 256 if m >= 256 else _round_up(m, 8)
    return tm, _round_up(m, tm)


# ---------------------------------------------------------------------------
# Pallas kernels
# ---------------------------------------------------------------------------
def _conv_act_kernel(p_ref, w_ref, b_ref, o_ref, *, act):
    # patches (TM, K) @ weight (K, C) on the MXU (bf16 in, f32 acc) + bias
    # + optional LeakyReLU, all fused; no stats for non-BN layers.
    y = jnp.dot(p_ref[...], w_ref[...], preferred_element_type=jnp.float32)
    y = y + b_ref[...]
    if act:
        y = jnp.where(y > 0, y, NEG_SLOPE * y)
    o_ref[...] = y.astype(o_ref.dtype)


def _conv_bn_act_kernel(p_ref, w_ref, b_ref, o_ref, sum_ref, ssq_ref, *,
                        act, rows, tile):
    # grid = (2, m_tiles).  Pass 0: accumulate per-channel batch stats in VMEM
    # scratch (no output write).  Pass 1: recompute the tile matmul and apply
    # the fused BatchNorm (training-mode, gamma=1/beta=0) + LeakyReLU.
    pass_id = pl.program_id(0)
    m_id = pl.program_id(1)
    n_m = pl.num_programs(1)

    def _matmul():
        y = jnp.dot(p_ref[...], w_ref[...], preferred_element_type=jnp.float32)
        return y + b_ref[...]

    @pl.when(pass_id == 0)
    def _stats_pass():
        y = _matmul()
        if rows % tile:  # mask zero-padded rows out of the batch statistics
            ridx = m_id * tile + lax.broadcasted_iota(jnp.int32, y.shape, 0)
            y = jnp.where(ridx < rows, y, 0.0)

        @pl.when(m_id == 0)
        def _():
            sum_ref[...] = jnp.zeros_like(sum_ref)
            ssq_ref[...] = jnp.zeros_like(ssq_ref)

        sum_ref[...] += jnp.sum(y, axis=0, keepdims=True)
        ssq_ref[...] += jnp.sum(y * y, axis=0, keepdims=True)

        @pl.when(m_id == n_m - 1)
        def _():
            mean = sum_ref[...] * (1.0 / rows)
            var = ssq_ref[...] * (1.0 / rows) - mean * mean
            inv = lax.rsqrt(var + BN_EPS)
            sum_ref[...] = inv            # reuse as scale
            ssq_ref[...] = -mean * inv    # reuse as shift

    @pl.when(pass_id == 1)
    def _apply_pass():
        y = _matmul() * sum_ref[...] + ssq_ref[...]
        if act:
            y = jnp.where(y > 0, y, NEG_SLOPE * y)
        o_ref[...] = y.astype(o_ref.dtype)


def _final_conv_fc_kernel(p_ref, w_ref, b_ref, a_ref, fcb_ref, o_ref):
    # Last conv (Cout=1, padded to 8 lanes) fused with the FC head; the narrow
    # (M5, Cout) feature tensor never leaves VMEM.
    feat = jnp.dot(p_ref[...], w_ref[...], preferred_element_type=jnp.float32)
    feat = feat + b_ref[...]
    o_ref[...] = jnp.dot(a_ref[...], feat,
                         preferred_element_type=jnp.float32) + fcb_ref[...]


# ---------------------------------------------------------------------------
# Kernel wrappers
# ---------------------------------------------------------------------------
def conv_block(patches, w2, b2, *, bn, act):
    m, k = patches.shape
    c = w2.shape[1]
    tm, m_pad = _tile_m(m)
    if m_pad != m:
        patches = jnp.pad(patches, ((0, m_pad - m), (0, 0)))
    n_m = m_pad // tm

    if bn:
        y = pl.pallas_call(
            functools.partial(_conv_bn_act_kernel, act=act, rows=m, tile=tm),
            out_shape=jax.ShapeDtypeStruct((m_pad, c), jnp.bfloat16),
            grid=(2, n_m),
            in_specs=[pl.BlockSpec((tm, k), lambda p, i: (i, 0)),
                      pl.BlockSpec((k, c), lambda p, i: (0, 0)),
                      pl.BlockSpec((1, c), lambda p, i: (0, 0))],
            # pass 0 parks on block 0 (never written there), pass 1 walks the
            # real output tiles -> no garbage / duplicate HBM writebacks.
            out_specs=pl.BlockSpec((tm, c), lambda p, i: (p * i, 0)),
            scratch_shapes=[pltpu.VMEM((1, c), jnp.float32),
                            pltpu.VMEM((1, c), jnp.float32)],
            compiler_params=pltpu.CompilerParams(
                dimension_semantics=("arbitrary", "arbitrary")),
        )(patches, w2, b2)
    else:
        y = pl.pallas_call(
            functools.partial(_conv_act_kernel, act=act),
            out_shape=jax.ShapeDtypeStruct((m_pad, c), jnp.bfloat16),
            grid=(n_m,),
            in_specs=[pl.BlockSpec((tm, k), lambda i: (i, 0)),
                      pl.BlockSpec((k, c), lambda i: (0, 0)),
                      pl.BlockSpec((1, c), lambda i: (0, 0))],
            out_specs=pl.BlockSpec((tm, c), lambda i: (i, 0)),
            compiler_params=pltpu.CompilerParams(
                dimension_semantics=("parallel",)),   # megacore on v7x
        )(patches, w2, b2)
    return y if m_pad == m else y[:m]


def final_conv_fc(patches, w2, b2, a_mat, fcb):
    m_pad, k = patches.shape
    n_pad = a_mat.shape[0]
    cp = w2.shape[1]
    return pl.pallas_call(
        _final_conv_fc_kernel,
        out_shape=jax.ShapeDtypeStruct((n_pad, cp), jnp.float32),
        grid=(1,),
        in_specs=[pl.BlockSpec((m_pad, k), lambda i: (0, 0)),
                  pl.BlockSpec((k, cp), lambda i: (0, 0)),
                  pl.BlockSpec((1, cp), lambda i: (0, 0)),
                  pl.BlockSpec((n_pad, m_pad), lambda i: (0, 0)),
                  pl.BlockSpec((1, cp), lambda i: (0, 0))],
        out_specs=pl.BlockSpec((n_pad, cp), lambda i: (0, 0)),
    )(patches, w2, b2, a_mat, fcb)


# ---------------------------------------------------------------------------
# Glue: im2col, spectral norm, parameter setup
# ---------------------------------------------------------------------------
def im2col(x):
    """x: (N, H, W, C) NHWC -> patch matrix (N*Ho*Wo, KH*KW*C), dtype preserved."""
    n, h, w, c = x.shape
    xp = jnp.pad(x, ((0, 0), (PAD, PAD), (PAD, PAD), (0, 0)))
    ho = (h + 2 * PAD - KSIZE) // STRIDE + 1
    wo = (w + 2 * PAD - KSIZE) // STRIDE + 1
    cols = []
    for di in range(KSIZE):
        for dj in range(KSIZE):
            cols.append(xp[:, di:di + STRIDE * ho:STRIDE,
                           dj:dj + STRIDE * wo:STRIDE, :])
    patches = jnp.stack(cols, axis=3)              # (N, Ho, Wo, KH*KW, C)
    return patches.reshape(n * ho * wo, KSIZE * KSIZE * c), ho, wo


def spectral_normalize(w, u0, n_iter=10):
    """W / sigma_max(W) with deterministic power iteration (W: (Cout,Cin,KH,KW))."""
    cout = w.shape[0]
    wm = w.reshape(cout, -1)
    u = u0 / (jnp.linalg.norm(u0) + 1e-12)
    v = None
    for _ in range(n_iter):
        v = wm.T @ u
        v = v / (jnp.linalg.norm(v) + 1e-12)
        u = wm @ v
        u = u / (jnp.linalg.norm(u) + 1e-12)
    sigma = u @ (wm @ v)
    return w / sigma


def init_params(key, num_channels, image_size):
    chans = [num_channels, 64, 128, 256, 512, 1]
    # Lane/sublane-friendly padded channel counts (extra channels are zeros):
    #   3 -> 8 (layer-1 K = 16*8 = 128), 64 -> 128, last Cout 1 -> 8.
    cpad = [_round_up(c, 8) if c <= 8 else _round_up(c, 128) for c in chans[:-1]]
    cpad.append(8)
    convs = []
    for i in range(5):
        cin, cout = chans[i], chans[i + 1]
        cin_p, cout_p = cpad[i], cpad[i + 1]
        key, kw, kb, ku = jax.random.split(key, 4)
        w = 0.05 * jax.random.normal(kw, (cout, cin, KSIZE, KSIZE), jnp.float32)
        b = 0.05 * jax.random.normal(kb, (cout,), jnp.float32)
        u0 = jax.random.normal(ku, (cout,), jnp.float32)
        w = spectral_normalize(w, u0)
        w_hwio = jnp.transpose(w, (2, 3, 1, 0))               # (KH, KW, Cin, Cout)
        w_pad = jnp.pad(w_hwio, ((0, 0), (0, 0),
                                 (0, cin_p - cin), (0, cout_p - cout)))
        convs.append(dict(
            w_hwio=w_hwio, b=b,                               # f32, for reference
            w2=w_pad.reshape(KSIZE * KSIZE * cin_p, cout_p).astype(jnp.bfloat16),
            b2=jnp.pad(b, (0, cout_p - cout))[None, :].astype(jnp.float32),
            bn=(i in (1, 2, 3)),     # BatchNorm2d after convs 2,3,4
            act=(i < 4),             # LeakyReLU after convs 1..4
        ))
    h, w_ = image_size
    for _ in range(5):
        h = (h + 2 * PAD - KSIZE) // STRIDE + 1
        w_ = (w_ + 2 * PAD - KSIZE) // STRIDE + 1
    feature_dim = h * w_ * 1
    key, kfw, kfb = jax.random.split(key, 3)
    fc_w = 0.05 * jax.random.normal(kfw, (1, feature_dim), jnp.float32)
    fc_b = 0.05 * jax.random.normal(kfb, (1,), jnp.float32)
    fc_b_pad = jnp.zeros((1, cpad[-1]), jnp.float32).at[0, 0].set(fc_b[0])
    return dict(convs=convs, fc_w=fc_w, fc_b=fc_b, fc_b_pad=fc_b_pad,
                cin_pad=cpad[0])


# ---------------------------------------------------------------------------
# Forward passes
# ---------------------------------------------------------------------------
def discriminator_forward(x_nchw, params):
    n = x_nchw.shape[0]
    x = jnp.transpose(x_nchw, (0, 2, 3, 1)).astype(jnp.float32)   # NCHW -> NHWC
    x = jnp.pad(x, ((0, 0), (0, 0), (0, 0), (0, params['cin_pad'] - x.shape[-1])))
    x = x.astype(jnp.bfloat16)

    # conv1 (no BN) + conv2..4 (BN), each a single fused pallas_call
    for layer in params['convs'][:-1]:
        patches, ho, wo = im2col(x)
        y = conv_block(patches, layer['w2'], layer['b2'],
                       bn=layer['bn'], act=layer['act'])
        x = y.reshape(n, ho, wo, -1)

    # final conv (Cout=1) fused with the FC head
    last = params['convs'][-1]
    patches, ho, wo = im2col(x)
    s = ho * wo
    m = n * s
    m_pad, n_pad = _round_up(m, 8), _round_up(n, 8)
    if m_pad != m:
        patches = jnp.pad(patches, ((0, m_pad - m), (0, 0)))
    # selection matrix folding fc_w over each image's flattened (Ho*Wo) features
    # (matches PyTorch's .view(N, -1) on the NCHW conv output, C == 1)
    a_mat = jnp.kron(jnp.eye(n, dtype=jnp.float32), params['fc_w'])   # (n, n*s)
    a_mat = jnp.pad(a_mat, ((0, n_pad - n), (0, m_pad - m)))
    out = final_conv_fc(patches, last['w2'], last['b2'], a_mat,
                        params['fc_b_pad'])
    return out[:n, :1]


def reference_forward(x_nchw, params):
    x = jnp.transpose(x_nchw, (0, 2, 3, 1))
    for layer in params['convs']:
        y = lax.conv_general_dilated(
            x, layer['w_hwio'], (STRIDE, STRIDE), ((PAD, PAD), (PAD, PAD)),
            dimension_numbers=('NHWC', 'HWIO', 'NHWC'))
        y = y + layer['b']
        if layer['bn']:
            mean = jnp.mean(y, axis=(0, 1, 2))
            var = jnp.var(y, axis=(0, 1, 2))
            y = (y - mean) / jnp.sqrt(var + BN_EPS)
        if layer['act']:
            y = jnp.where(y > 0, y, NEG_SLOPE * y)
        x = y
    feats = jnp.transpose(x, (0, 3, 1, 2)).reshape(x.shape[0], -1)
    return feats @ params['fc_w'].T + params['fc_b']


# ---------------------------------------------------------------------------
if __name__ == "__main__":
    key = jax.random.PRNGKey(0)
    num_channels = 3
    image_size = (32, 32)   # small but divides cleanly through 5 stride-2 convs
    batch = 2

    key, xk = jax.random.split(key)
    x = jax.random.normal(xk, (batch, num_channels, *image_size), jnp.float32)
    params = init_params(key, num_channels, image_size)

    out = discriminator_forward(x, params)
    out = jax.block_until_ready(out)

    ref = reference_forward(x, params)
    assert out.shape == (batch, 1), out.shape
    # bf16 matmul operands / bf16 inter-layer activations vs. the f32 reference
    assert jnp.allclose(out, ref, rtol=2e-2, atol=2e-2), (out, ref)
    print("KERNEL_OK")
</pallas_src>

<mosaic_0001>
module attributes {stable_mosaic.version = 11 : i64} {
  func.func @_conv_act_kernel(%arg0: i32, %arg1: memref<256x128xbf16, #tpu.memory_space<vmem>>, %arg2: memref<128x128xbf16, #tpu.memory_space<vmem>>, %arg3: memref<1x128xf32, #tpu.memory_space<vmem>>, %arg4: memref<256x128xbf16, #tpu.memory_space<vmem>>) attributes {dimension_semantics = [#tpu.dimension_semantics<parallel>], iteration_bounds = array<i64: 2>, scalar_prefetch = 0 : i64, scratch_operands = 0 : i64, tpu.core_type = #tpu.core_type<tc>, window_params = [{transform_indices = @transform_0, window_bounds = array<i64: 256, 128>}, {pipeline_mode = #tpu.pipeline_mode<synchronous>, transform_indices = @transform_1, window_bounds = array<i64: 128, 128>}, {pipeline_mode = #tpu.pipeline_mode<synchronous>, transform_indices = @transform_2, window_bounds = array<i64: 1, 128>}, {transform_indices = @transform_3, window_bounds = array<i64: 256, 128>}]} {
    %c0 = arith.constant 0 : index
    %c0_0 = arith.constant 0 : index
    %0 = vector.load %arg1[%c0, %c0_0] : memref<256x128xbf16, #tpu.memory_space<vmem>>, vector<256x128xbf16>
    %c0_1 = arith.constant 0 : index
    %c0_2 = arith.constant 0 : index
    %1 = vector.load %arg2[%c0_1, %c0_2] : memref<128x128xbf16, #tpu.memory_space<vmem>>, vector<128x128xbf16>
    %cst = arith.constant dense<0.000000e+00> : vector<256x128xf32>
    %2 = tpu.matmul %0, %1, %cst {dimension_numbers = #tpu.dot_dimension_numbers<[1], [0], [0], [1], [0, 0, 1, 1], [], []>} : vector<256x128xbf16>, vector<128x128xbf16>, vector<256x128xf32> -> vector<256x128xf32>
    %c0_3 = arith.constant 0 : index
    %c0_4 = arith.constant 0 : index
    %3 = vector.load %arg3[%c0_3, %c0_4] : memref<1x128xf32, #tpu.memory_space<vmem>>, vector<1x128xf32>
    %4 = vector.broadcast %3 : vector<1x128xf32> to vector<256x128xf32>
    %5 = arith.addf %2, %4 : vector<256x128xf32>
    %cst_5 = arith.constant 0.000000e+00 : f32
    %6 = vector.broadcast %cst_5 : f32 to vector<256x128xf32>
    %7 = arith.cmpf ogt, %5, %6 : vector<256x128xf32>
    %cst_6 = arith.constant 2.000000e-01 : f32
    %8 = vector.broadcast %cst_6 : f32 to vector<256x128xf32>
    %9 = arith.mulf %8, %5 : vector<256x128xf32>
    %10 = arith.select %7, %5, %9 : vector<256x128xi1>, vector<256x128xf32>
    %11 = arith.truncf %10 : vector<256x128xf32> to vector<256x128xbf16>
    %c0_7 = arith.constant 0 : index
    %c0_8 = arith.constant 0 : index
    %12 = vector.load %arg4[%c0_7, %c0_8] : memref<256x128xbf16, #tpu.memory_space<vmem>>, vector<256x128xbf16>
    tpu.vector_store %arg4[%c0_7, %c0_8], %11 {strides = array<i32>} : memref<256x128xbf16, #tpu.memory_space<vmem>>, vector<256x128xbf16>,
    return
  }
  func.func @transform_0(%arg0: i32) -> (i32, i32) {
    %c0_i32 = arith.constant 0 : i32
    %c0_i32_0 = arith.constant 0 : i32
    return %arg0, %c0_i32 : i32, i32
  }
  func.func @transform_1(%arg0: i32) -> (i32, i32) {
    %c0_i32 = arith.constant 0 : i32
    %c0_i32_0 = arith.constant 0 : i32
    %c0_i32_1 = arith.constant 0 : i32
    return %c0_i32, %c0_i32_0 : i32, i32
  }
  func.func @transform_2(%arg0: i32) -> (i32, i32) {
    %c0_i32 = arith.constant 0 : i32
    %c0_i32_0 = arith.constant 0 : i32
    %c0_i32_1 = arith.constant 0 : i32
    return %c0_i32, %c0_i32_0 : i32, i32
  }
  func.func @transform_3(%arg0: i32) -> (i32, i32) {
    %c0_i32 = arith.constant 0 : i32
    %c0_i32_0 = arith.constant 0 : i32
    return %arg0, %c0_i32 : i32, i32
  }
}

</mosaic_0001>

<bundles_post_ra>
// kernel: tpu_custom_call.1
= control target key start
LH: loop header
LB: loop body
LE: loop exit
PB: predicated region body
PF: predicated region fallthrough
CT: control target
= control target key end

     0   :  { %8 = vsyncpa [#allocation3], 0  ;;  %s1712_s0 = inlined_call_operand.hbm [shape: bf16[512,128], index: 0, kind: input, shape index: {}]   ;;  %s1713_s1 = inlined_call_operand.hbm [shape: bf16[128,128], index: 1, kind: input, shape index: {}]   ;;  %s1714_s2 = inlined_call_operand.vmem [shape: f32[1,128], index: 2, kind: input, shape index: {}]   ;;  %s1715_s3 = inlined_call_operand.hbm [shape: bf16[512,128], index: 3, kind: output, shape index: {}]  }
   0x1   :  { %10 = vsyncpa [#allocation3 + $0x1], 0 }
   0x2   :  { %11 = vsyncpa [#allocation6], 0 }
   0x3   :  { %12 = vsyncpa [#allocation4], 0 }
   0x4   :  { %14 = vsyncpa [#allocation4 + $0x1], 0  ;;  %s1446_s12 = smov 0   ;;  %s1448_s13 = smov 0  }
   0x5   :  { %s1450_s14 = smov 0   ;;  %s1452_s15 = smov 0  }
   0x6 LB: > { %s1467_s16 = sadd.s32 4294967295, %s1417_s15   ;;  %s920_s17 = sadd.s32 4294967294, %s1417_s15   ;;  %s1417_s15 = sphi %s1452_s15, %s1737_s15   ;;  %s1413_s14 = sphi %s1450_s14, %s1736_s14   ;;  %s1409_s13 = sphi %s1448_s13, %s1735_s13   ;;  %s1405_s12 = sphi %s1446_s12, %s1734_s12  }
   0x7   : > { %p40_p0 = scmp.ne.s32.totalorder %s1409_s13, %s1405_s12  ;;  %p1716_p1 = scmp.eq.s32.totalorder %s1467_s16, 0 }
   0x8   : > { %p112_p3 = scmp.eq.s32.totalorder %s920_s17, 1  ;;  %p921_p5 = scmp.ge.s32.totalorder %s1417_s15, 1 }
   0x9   : > { %p1476_p4 = por %p1716_p1, %p40_p0  ;;  %p119_p7 = scmp.lt.s32.totalorder %s1417_s15, 3 }
   0xa   : > { %p1481_p6 = por %p112_p3, %p40_p0  ;;  %s1419_s21 = smov [#allocation5]  }
   0xb   : > { %s1720_s18 = scalar_select %p1476_p4, 1, 0 }
   0xc   : > { %s1721_s19 = scalar_select %p1481_p6, 1, 0 }
   0xd   : > { %p1486_p8 = pnand %p921_p5, %p119_p7  ;;  %s131_s22 = sshll.u32 %s1419_s21, 4  ;;  %s132_s22 = int_to_ptr.vmem [resolvable:$true] %s131_s22 }
   0xe   : > { %s1500_s24 = sadd.s32 1, %s1417_s15   ;;  %s27_s25 = sadd.s32 1, %s1413_s14 }
   0xf   : > { %s1722_s20 = scalar_select %p1486_p8, 1, 0 }
  0x10   : > { %p1218_p9 = pneg %p1486_p8  ;;  %s24_s26 = ssub.s32 %s1417_s15, %s1500_s24 }
  0x11   : > { %s1306_s27 = scalar_lea.vmem %s132_s22, 1024  ;;  %p1314_p5 = scmp.lt.s32.totalorder %s132_s22, %s132_s22 }
  0x12   : > { %p1495_p11 = pnand %p1218_p9, %p1716_p1  ;;  %p1307_p13 = scmp.ne.s32.totalorder %s132_s22, %s1306_s27 }
  0x13   : > { %p1315_p7 = scmp.lt.s32.totalorder %s1306_s27, %s1306_s27 }
  0x14   : > { %p1297_p12 = pneg %p1495_p11 }
  0x15   : > { %p1316_p10 = por %p1315_p7, %p1314_p5 }
  0x16   : > { %p1309_p0 = pnand %p1307_p13, %p1297_p12 }
  0x18   : > { %p1310_p3 = pneg %p1309_p0 }
  0x1a   : > { %p1317_p2 = pnand %p1316_p10, %p1310_p3 }
  0x1c   : > { %1320 = shalt.err (!%p1317_p2)
}
  0x1d   : > { %s1420_s28 = smov 64   ;;  %s1421_s29 = smov 4  }
  0x1e   : > { %1221 = dma.hbm_to_vmem [thread:$0]  (!%p1495_p11), %s1713_s1, 1024, %s132_s22, [#allocation6], %s1420_s28, %s1420_s28, %s1421_s29  }
  0x1f   : > { %p25_p2 = scmp.eq.s32.totalorder %s24_s26, 0  ;;  %p34_p9 = scmp.ne.s32.totalorder %s1413_s14, %s1409_s13 }
  0x20   : > { %p35_p10 = scmp.eq.s32.totalorder %s1417_s15, 0  ;;  %p1231_p12 = scmp.lt.s32.totalorder %s1417_s15, 2 }
  0x21   : > { %s1520_s5 = scalar_select %p25_p2, %s1413_s14, %s27_s25  }
  0x22   : > { %p36_p13 = por %p35_p10, %p34_p9  ;;  %p1724_p0 = scmp.eq.s32.totalorder %s1467_s16, 1 }
  0x23   : > { %s148_s7 = sand.u32 1, %s1413_s14   ;;  %s993_s8 = sshll.u32 %s1417_s15, 11 }
  0x24   : > { %p1524_p3 = por %p1724_p0, %p34_p9  ;;  %s924_s9 = sshll.u32 %s148_s7, 7 }
  0x25   : > { %s1533_s17 = scalar_lea.hbm %s1712_s0, %s993_s8  ;;  %s152_s21 = scalar_lea.vmem [#allocation2], %s924_s9 }
  0x26   : > { %s1725_s6 = scalar_select %p1524_p3, 1, 0 }
  0x27   : > { %s159_s22 = sshll.u32 %s152_s21, 4  ;;  %p1535_p11 = pnand %p1231_p12, %p36_p13  ;;  %s1539_s22 = int_to_ptr.vmem [resolvable:$true] %s159_s22 }
  0x28   : > { %s1541_s25 = scalar_lea.sflag [#allocation3], %s148_s7  ;;  %s1321_s26 = scalar_lea.hbm %s1533_s17, 2048 }
  0x29   : > { %p1322_p5 = scmp.ne.s32.totalorder %s1533_s17, %s1321_s26  ;;  %p1323_p7 = pneg %p1535_p11 }
  0x2a   : > { %s1326_s4 = scalar_lea.hbm %s1712_s0, 4096  ;;  %p1327_p10 = scmp.lt.s32.totalorder %s1533_s17, %s1712_s0 }
  0x2b   : > { %p1324_p2 = pnand %p1323_p7, %p1322_p5  ;;  %p1328_p12 = scmp.lt.s32.totalorder %s1326_s4, %s1321_s26 }
  0x2d   : > { %p1325_p9 = pneg %p1324_p2  ;;  %p1329_p13 = por %p1328_p12, %p1327_p10 }
  0x2f   : > { %p1330_p0 = pnand %p1329_p13, %p1325_p9 }
  0x31   : > { %1333 = shalt.err (!%p1330_p0)
}
  0x32   : > { %s1334_s7 = scalar_lea.vmem %s1539_s22, 2048  ;;  %s1422_s10 = smov [#allocation2]  }
  0x33   : > { %p1335_p1 = scmp.ne.s32.totalorder %s1539_s22, %s1334_s7  ;;  %s1339_s11 = sshll.u32 %s1422_s10, 4  ;;  %s1340_s11 = int_to_ptr.vmem [resolvable:$false] %s1339_s11 }
  0x34   : > { %s1341_s21 = scalar_lea.vmem %s1340_s11, 4096  ;;  %p1342_p2 = scmp.lt.s32.totalorder %s1539_s22, %s1340_s11 }
  0x35   : > { %p1337_p6 = pnand %p1335_p1, %p1323_p7  ;;  %p1343_p3 = scmp.lt.s32.totalorder %s1341_s21, %s1334_s7 }
  0x37   : > { %p1338_p5 = pneg %p1337_p6  ;;  %p1344_p4 = por %p1343_p3, %p1342_p2 }
  0x39   : > { %p1345_p8 = pnand %p1344_p4, %p1338_p5 }
  0x3b   : > { %1348 = shalt.err (!%p1345_p8)
}
  0x3c   : > { %1225 = dma.hbm_to_vmem [thread:$0]  (!%p1535_p11), %s1533_s17, 2048, %s1539_s22, %s1541_s25, %s1420_s28, %s1420_s28, %s1421_s29  }
  0x3d   : > { %p1727_p1 = scmp.ne.s32.totalorder %s1722_s20, 0 }
  0x3e   : > { %s1568_s26 = sand.u32 (!%p1727_p1), 1, %s1409_s13   ;;  %p1728_p4 = scmp.ne.s32.totalorder (!%p1727_p1), %s1720_s18, 0 }
  0x3f   : > { %171 = sbr.rel (%p1727_p1) target bundleno = 353 (0x161), region = 32  ;;  %s928_s27 = sshll.u32 (!%p1727_p1), %s1568_s26, 7 }
  0x40   : > { %s174_s30 = scalar_lea.sflag (!%p1727_p1), [#allocation3], %s1568_s26  ;;  %s1574_s23 = scalar_lea.vmem (!%p1727_p1), [#allocation2], %s928_s27 }
  0x44   : > { %1392 = dma.done.wait (%p1728_p4), %s174_s30, 2048  }
  0x45   : > { %1394 = vsyncadd (%p1728_p4), %s174_s30, 4294965248  ;;  %p1729_p6 = scmp.eq.s32.totalorder %s1467_s16, 0 }
  0x47   : > { %1396 = dma.done.wait (%p1729_p6), [#allocation6], 1024   ;;  %p1730_p8 = pmov %p1729_p6 }
  0x48   : > { %v1271_v0 = vld [vmem:[#allocation5 + $0x38] sm:$0xff]   ;;  %v1272_v1 = vld [vmem:[#allocation5 + $0x30] sm:$0xff]   ;;  %v1273_v2 = vld [vmem:[#allocation5 + $0x28] sm:$0xff]   ;;  %s1618_s28 = scalar_lea.vmem [#allocation7], %s928_s27  ;;  %s1026_s29 = sshll.u32 %s1467_s16, 11 }
  0x49   : > { %1398 = vsyncadd (%p1730_p8), [#allocation6], 4294966272  ;;  %1146 = vmatprep.subr.bf16.mxu0 %v1271_v0  ;;  %1194 = vmatprep.subr.bf16.mxu1 %v1271_v0  ;;  %v1274_v3 = vld [vmem:[#allocation5 + $0x20] sm:$0xff]   ;;  %v1275_v6 = vld [vmem:[#allocation5 + $0x18] sm:$0xff]   ;;  %s837_s17 = sshll.u32 %s1618_s28, 4  ;;  %s1665_s4 = scalar_lea.hbm %s1715_s3, %s1026_s29  ;;  %s1667_s17 = int_to_ptr.vmem [resolvable:$true] %s837_s17 }
  0x4a   : > { %1147 = vmatpush3.bf16.msra.mxu0 %v1271_v0  ;;  %1202 = vmatpush3.bf16.msra.mxu1 %v1271_v0  ;;  %v1279_v4 = vld [vmem:[%s1574_s23] sm:$0xff]   ;;  %v1276_v7 = vld [vmem:[#allocation5 + $0x10] sm:$0xff]   ;;  %v1277_v8 = vld [vmem:[#allocation5 + $0x8] sm:$0xff]   ;;  %s824_s16 = scalar_lea.sflag [#allocation4], %s1568_s26  ;;  %s1349_s8 = scalar_lea.vmem %s1667_s17, 2048 }
  0x4b   : > { %1148 = vmatprep.subr.bf16.mxu0 %v1272_v1  ;;  %1195 = vmatprep.subr.bf16.mxu1 %v1272_v1  ;;  %v1280_v5 = vld [vmem:[%s1574_s23 + $0x40] sm:$0xff]   ;;  %v1281_v10 = vld [vmem:[%s1574_s23 + $0x8] sm:$0xff]   ;;  %v1283_v12 = vld [vmem:[%s1574_s23 + $0x10] sm:$0xff]   ;;  %p1350_p3 = scmp.ne.s32.totalorder %s1667_s17, %s1349_s8  ;;  %p1731_p11 = scmp.ne.s32.totalorder %s1725_s6, 0 }
  0x4c   : > { %1162 = vmatprep.mubr.bf16.mxu0 %v1279_v4  ;;  %1178 = vmatprep.mubr.bf16.mxu1 %v1280_v5  ;;  %v1278_v9 = vld [vmem:[#allocation5] sm:$0xff]   ;;  %v1282_v11 = vld [vmem:[%s1574_s23 + $0x48] sm:$0xff]   ;;  %v1284_v13 = vld [vmem:[%s1574_s23 + $0x50] sm:$0xff]   ;;  %s1423_s9 = smov [#allocation7]  }
  0x4d   : > { %v1285_v14 = vld [vmem:[%s1574_s23 + $0x18] sm:$0xff]   ;;  %v1287_v16 = vld [vmem:[%s1574_s23 + $0x20] sm:$0xff]   ;;  %v1289_v18 = vld [vmem:[%s1574_s23 + $0x28] sm:$0xff]   ;;  %p1351_p7 = pnand %p1350_p3, %p1731_p11  ;;  %s1353_s7 = sshll.u32 %s1423_s9, 4  ;;  %s1354_s7 = int_to_ptr.vmem [resolvable:$false] %s1353_s7 }
  0x4e   : > { %1149 = vmatpush3.bf16.msra.mxu0 %v1272_v1  ;;  %1203 = vmatpush3.bf16.msra.mxu1 %v1272_v1  ;;  %v1286_v15 = vld [vmem:[%s1574_s23 + $0x58] sm:$0xff]   ;;  %v1288_v17 = vld [vmem:[%s1574_s23 + $0x60] sm:$0xff]   ;;  %v1290_v19 = vld [vmem:[%s1574_s23 + $0x68] sm:$0xff]   ;;  %s1355_s10 = scalar_lea.vmem %s1354_s7, 4096  ;;  %p1356_p10 = scmp.lt.s32.totalorder %s1667_s17, %s1354_s7 }
  0x4f   : > { %1150 = vmatprep.subr.bf16.mxu0 %v1273_v2  ;;  %1196 = vmatprep.subr.bf16.mxu1 %v1273_v2  ;;  %v1291_v20 = vld [vmem:[%s1574_s23 + $0x30] sm:$0xff]   ;;  %v1293_v22 = vld [vmem:[%s1574_s23 + $0x38] sm:$0xff]   ;;  %v1603_v24 = vld [vmem:[%s1714_s2] ss:$0 sm:$0xff]  ;;  %p1352_p9 = pneg %p1351_p7  ;;  %p1357_p12 = scmp.lt.s32.totalorder %s1355_s10, %s1349_s8 }
  0x50   : > { %v1292_v21 = vld [vmem:[%s1574_s23 + $0x70] sm:$0xff]   ;;  %v1294_v23 = vld [vmem:[%s1574_s23 + $0x78] sm:$0xff]  }
  0x51   : > { %p1358_p13 = por %p1357_p12, %p1356_p10 }
  0x52   : > { %1151 = vmatpush3.bf16.msra.mxu0 %v1273_v2  ;;  %1204 = vmatpush3.bf16.msra.mxu1 %v1273_v2 }
  0x53   : > { %1152 = vmatprep.subr.bf16.mxu0 %v1274_v3  ;;  %1197 = vmatprep.subr.bf16.mxu1 %v1274_v3  ;;  %p1359_p0 = pnand %p1358_p13, %p1352_p9 }
  0x56   : > { %1153 = vmatpush3.bf16.msra.mxu0 %v1274_v3  ;;  %1205 = vmatpush3.bf16.msra.mxu1 %v1274_v3 }
  0x57   : > { %1154 = vmatprep.subr.bf16.mxu0 %v1275_v6  ;;  %1198 = vmatprep.subr.bf16.mxu1 %v1275_v6 }
  0x5a   : > { %1155 = vmatpush3.bf16.msra.mxu0 %v1275_v6  ;;  %1206 = vmatpush3.bf16.msra.mxu1 %v1275_v6 }
  0x5b   : > { %1156 = vmatprep.subr.bf16.mxu0 %v1276_v7  ;;  %1199 = vmatprep.subr.bf16.mxu1 %v1276_v7 }
  0x5e   : > { %1157 = vmatpush3.bf16.msra.mxu0 %v1276_v7  ;;  %1207 = vmatpush3.bf16.msra.mxu1 %v1276_v7 }
  0x5f   : > { %1158 = vmatprep.subr.bf16.mxu0 %v1277_v8  ;;  %1200 = vmatprep.subr.bf16.mxu1 %v1277_v8 }
  0x62   : > { %1159 = vmatpush3.bf16.msra.mxu0 %v1277_v8  ;;  %1208 = vmatpush3.bf16.msra.mxu1 %v1277_v8 }
  0x63   : > { %1160 = vmatprep.subr.bf16.mxu0 %v1278_v9  ;;  %1201 = vmatprep.subr.bf16.mxu1 %v1278_v9 }
  0x66   : > { %1161 = vmatpush3.bf16.msra.mxu0 %v1278_v9  ;;  %1209 = vmatpush3.bf16.msra.mxu1 %v1278_v9 }
  0x69   : > { %1163 = vmatmul.mubr.bf16.vlgmr.msra.gmra.mxu0 %v1281_v10  ;;  %1179 = vmatmul.mubr.bf16.vlgmr.msra.gmra.mxu1 %v1282_v11 }
  0x6a   : > { %1166 = vmatprep.mubr.bf16.mxu0 %v1283_v12  ;;  %1182 = vmatprep.mubr.bf16.mxu1 %v1284_v13 }
  0x71   : > { %1167 = vmatmul.mubr.bf16.gmra.mxu0 %v1285_v14  ;;  %1183 = vmatmul.mubr.bf16.gmra.mxu1 %v1286_v15 }
  0x72   : > { %1170 = vmatprep.mubr.bf16.mxu0 %v1287_v16  ;;  %1186 = vmatprep.mubr.bf16.mxu1 %v1288_v17 }
  0x79   : > { %1171 = vmatmul.mubr.bf16.gmra.mxu0 %v1289_v18  ;;  %1187 = vmatmul.mubr.bf16.gmra.mxu1 %v1290_v19 }
  0x7a   : > { %1174 = vmatprep.mubr.bf16.mxu0 %v1291_v20  ;;  %1190 = vmatprep.mubr.bf16.mxu1 %v1292_v21 }
  0x81   : > { %1175 = vmatmul.mubr.bf16.gmra.mxu0 %v1293_v22  ;;  %1191 = vmatmul.mubr.bf16.gmra.mxu1 %v1294_v23 }
 0x129   : > { %v1164_v25 = vpop.f32.mrf.mxu0  ;;  %v1180_v26 = vpop.f32.mrf.mxu1 }
 0x12a   : > { %v449_v27 = vadd.f32 %v1164_v25, %v1603_v24  ;;  %v513_v28 = vadd.f32 %v1180_v26, %v1603_v24 }
 0x12b   : > { %v440_v29 = vpop.f32.mrf.mxu0  ;;  %v504_v30 = vpop.f32.mrf.mxu1 }
 0x12c   : > { %vm569_vm0 = vcmp.gt.f32.partialorder %v449_v27, 0.0  ;;  %v601_v31 = vmul.f32 0.2, %v449_v27  ;;  %vm585_vm1 = vcmp.gt.f32.partialorder %v513_v28, 0.0  ;;  %v617_v32 = vmul.f32 0.2, %v513_v28 }
 0x12d   : > { %v441_v33 = vadd.f32 %v1603_v24, %v440_v29  ;;  %v505_v34 = vadd.f32 %v1603_v24, %v504_v30  ;;  %v1165_v35 = vpop.f32.mrf.mxu0  ;;  %v1181_v36 = vpop.f32.mrf.mxu1 }
 0x12e   : > { %v633_v37 = vsel %vm569_vm0, %v449_v27, %v601_v31  ;;  %v452_v38 = vadd.f32 %v1165_v35, %v1603_v24  ;;  %v516_v39 = vadd.f32 %v1181_v36, %v1603_v24  ;;  %v649_v40 = vsel %vm585_vm1, %v513_v28, %v617_v32 }
 0x12f   : > { %vm567_vm2 = vcmp.gt.f32.partialorder %v441_v33, 0.0  ;;  %v599_v41 = vmul.f32 0.2, %v441_v33  ;;  %vm583_vm3 = vcmp.gt.f32.partialorder %v505_v34, 0.0  ;;  %v443_v42 = vpop.f32.mrf.mxu0  ;;  %v507_v43 = vpop.f32.mrf.mxu1  ;;  %v615_v47 = vmul.f32 0.2, %v505_v34 }
 0x130   : > { %vm570_vm4 = vcmp.gt.f32.partialorder %v452_v38, 0.0  ;;  %v602_v44 = vmul.f32 0.2, %v452_v38  ;;  %vm586_vm5 = vcmp.gt.f32.partialorder %v516_v39, 0.0  ;;  %v618_v45 = vmul.f32 0.2, %v516_v39 }
 0x131   : > { %v631_v46 = vsel %vm567_vm2, %v441_v33, %v599_v41  ;;  %v444_v48 = vadd.f32 %v1603_v24, %v443_v42  ;;  %v508_v49 = vadd.f32 %v1603_v24, %v507_v43  ;;  %v1168_v50 = vpop.f32.mrf.mxu0  ;;  %v1184_v51 = vpop.f32.mrf.mxu1  ;;  %v647_v63 = vsel %vm583_vm3, %v505_v34, %v615_v47 }
 0x132   : > { %v634_v52 = vsel %vm570_vm4, %v452_v38, %v602_v44  ;;  %v650_v53 = vsel %vm586_vm5, %v516_v39, %v618_v45  ;;  %v465_v54 = vadd.f32 %v1168_v50, %v1603_v24  ;;  %v529_v55 = vadd.f32 %v1184_v51, %v1603_v24 }
 0x133   : > { %v1035_v56 = vpack.c.bf16 %v634_v52, %v633_v37  ;;  %v1075_v57 = vpack.c.bf16 %v650_v53, %v649_v40  ;;  %vm568_vm6 = vcmp.gt.f32.partialorder %v444_v48, 0.0  ;;  %v600_v58 = vmul.f32 0.2, %v444_v48  ;;  %v456_v59 = vpop.f32.mrf.mxu0  ;;  %v520_v60 = vpop.f32.mrf.mxu1 }
 0x134   : > { %vm584_vm7 = vcmp.gt.f32.partialorder %v508_v49, 0.0  ;;  %v616_v61 = vmul.f32 0.2, %v508_v49  ;;  %vm573_vm8 = vcmp.gt.f32.partialorder %v465_v54, 0.0  ;;  %v605_v62 = vmul.f32 0.2, %v465_v54 }
 0x135   : > { %1107 = vst [vmem:[%s1618_s28 + $0x8] sm:$0xff] %v1035_v56   ;;  %1115 = vst [vmem:[%s1618_s28 + $0x48] sm:$0xff] %v1075_v57   ;;  %v632_v0 = vsel %vm568_vm6, %v444_v48, %v600_v58  ;;  %v621_v1 = vmul.f32 0.2, %v529_v55  ;;  %v457_v2 = vadd.f32 %v1603_v24, %v456_v59  ;;  %v1169_v3 = vpop.f32.mrf.mxu0  ;;  %v1185_v4 = vpop.f32.mrf.mxu1  ;;  %vm589_vm9 = vcmp.gt.f32.partialorder %v529_v55, 0.0 }
 0x136   : > { %v1030_v5 = vpack.c.bf16 %v632_v0, %v631_v46  ;;  %v648_v6 = vsel %vm584_vm7, %v508_v49, %v616_v61  ;;  %v521_v7 = vadd.f32 %v1603_v24, %v520_v60  ;;  %v637_v9 = vsel %vm573_vm8, %v465_v54, %v605_v62 }
 0x137   : > { %v1070_v8 = vpack.c.bf16 %v648_v6, %v647_v63  ;;  %vm571_vm10 = vcmp.gt.f32.partialorder %v457_v2, 0.0  ;;  %v603_v10 = vmul.f32 0.2, %v457_v2  ;;  %v459_v11 = vpop.f32.mrf.mxu0  ;;  %v523_v12 = vpop.f32.mrf.mxu1  ;;  %v468_v14 = vadd.f32 %v1169_v3, %v1603_v24 }
 0x138   : > { %1031 = vst [vmem:[%s1618_s28] sm:$0xff] %v1030_v5   ;;  %vm587_vm11 = vcmp.gt.f32.partialorder %v521_v7, 0.0  ;;  %v619_v13 = vmul.f32 0.2, %v521_v7  ;;  %v532_v15 = vadd.f32 %v1185_v4, %v1603_v24  ;;  %v653_v16 = vsel %vm589_vm9, %v529_v55, %v621_v1 }
 0x139   : > { %1114 = vst [vmem:[%s1618_s28 + $0x40] sm:$0xff] %v1070_v8   ;;  %v635_v17 = vsel %vm571_vm10, %v457_v2, %v603_v10  ;;  %v460_v18 = vadd.f32 %v1603_v24, %v459_v11  ;;  %v524_v19 = vadd.f32 %v1603_v24, %v523_v12  ;;  %v1172_v20 = vpop.f32.mrf.mxu0  ;;  %v1188_v21 = vpop.f32.mrf.mxu1  ;;  %vm574_vm12 = vcmp.gt.f32.partialorder %v468_v14, 0.0 }
 0x13a   : > { %v651_v22 = vsel %vm587_vm11, %v521_v7, %v619_v13  ;;  %v606_v23 = vmul.f32 0.2, %v468_v14  ;;  %vm590_vm13 = vcmp.gt.f32.partialorder %v532_v15, 0.0  ;;  %v622_v25 = vmul.f32 0.2, %v532_v15 }
 0x13b   : > { %vm572_vm14 = vcmp.gt.f32.partialorder %v460_v18, 0.0  ;;  %v604_v26 = vmul.f32 0.2, %v460_v18  ;;  %vm588_vm15 = vcmp.gt.f32.partialorder %v524_v19, 0.0  ;;  %v472_v27 = vpop.f32.mrf.mxu0  ;;  %v536_v28 = vpop.f32.mrf.mxu1  ;;  %v620_v30 = vmul.f32 0.2, %v524_v19 }
 0x13c   : > { %v638_v29 = vsel %vm574_vm12, %v468_v14, %v606_v23  ;;  %v481_v31 = vadd.f32 %v1172_v20, %v1603_v24  ;;  %v545_v32 = vadd.f32 %v1188_v21, %v1603_v24  ;;  %v654_v34 = vsel %vm590_vm13, %v532_v15, %v622_v25 }
 0x13d   : > { %v1045_v33 = vpack.c.bf16 %v638_v29, %v637_v9  ;;  %v636_v35 = vsel %vm572_vm14, %v460_v18, %v604_v26  ;;  %v473_v36 = vadd.f32 %v1603_v24, %v472_v27  ;;  %v1173_v37 = vpop.f32.mrf.mxu0  ;;  %v1189_v38 = vpop.f32.mrf.mxu1  ;;  %v1085_v39 = vpack.c.bf16 %v654_v34, %v653_v16 }
 0x13e   : > { %v1040_v40 = vpack.c.bf16 %v636_v35, %v635_v17  ;;  %v652_v41 = vsel %vm588_vm15, %v524_v19, %v620_v30  ;;  %vm577_vm0 = vcmp.gt.f32.partialorder %v481_v31, 0.0  ;;  %v609_v43 = vmul.f32 0.2, %v481_v31 }
 0x13f   : > { %1109 = vst [vmem:[%s1618_s28 + $0x18] sm:$0xff] %v1045_v33   ;;  %v1080_v42 = vpack.c.bf16 %v652_v41, %v651_v22  ;;  %vm593_vm1 = vcmp.gt.f32.partialorder %v545_v32, 0.0  ;;  %v625_v44 = vmul.f32 0.2, %v545_v32  ;;  %v475_v45 = vpop.f32.mrf.mxu0  ;;  %v539_v46 = vpop.f32.mrf.mxu1  ;;  %1117 = vst [vmem:[%s1618_s28 + $0x58] sm:$0xff] %v1085_v39   ;;  %vm575_vm2 = vcmp.gt.f32.partialorder %v473_v36, 0.0 }
 0x140   : > { %1108 = vst [vmem:[%s1618_s28 + $0x10] sm:$0xff] %v1040_v40   ;;  %v607_v47 = vmul.f32 0.2, %v473_v36  ;;  %v537_v48 = vadd.f32 %v1603_v24, %v536_v28  ;;  %v484_v49 = vadd.f32 %v1173_v37, %v1603_v24  ;;  %v641_v50 = vsel %vm577_vm0, %v481_v31, %v609_v43 }
 0x141   : > { %1116 = vst [vmem:[%s1618_s28 + $0x50] sm:$0xff] %v1080_v42   ;;  %v548_v51 = vadd.f32 %v1189_v38, %v1603_v24  ;;  %v476_v52 = vadd.f32 %v1603_v24, %v475_v45  ;;  %v1176_v53 = vpop.f32.mrf.mxu0  ;;  %v1192_v54 = vpop.f32.mrf.mxu1  ;;  %v657_v55 = vsel %vm593_vm1, %v545_v32, %v625_v44  ;;  %v540_v63 = vadd.f32 %v1603_v24, %v539_v46 }
 0x142   : > { %v639_v56 = vsel %vm575_vm2, %v473_v36, %v607_v47  ;;  %vm591_vm3 = vcmp.gt.f32.partialorder %v537_v48, 0.0  ;;  %vm578_vm4 = vcmp.gt.f32.partialorder %v484_v49, 0.0  ;;  %v610_v57 = vmul.f32 0.2, %v484_v49 }
 0x143   : > { %vm594_vm5 = vcmp.gt.f32.partialorder %v548_v51, 0.0  ;;  %v626_v58 = vmul.f32 0.2, %v548_v51  ;;  %vm576_vm6 = vcmp.gt.f32.partialorder %v476_v52, 0.0  ;;  %v488_v59 = vpop.f32.mrf.mxu0  ;;  %v552_v60 = vpop.f32.mrf.mxu1  ;;  %v623_v61 = vmul.f32 0.2, %v537_v48 }
 0x144   : > { %v608_v62 = vmul.f32 0.2, %v476_v52  ;;  %v497_v0 = vadd.f32 %v1176_v53, %v1603_v24  ;;  %v642_v1 = vsel %vm578_vm4, %v484_v49, %v610_v57  ;;  %v561_v3 = vadd.f32 %v1192_v54, %v1603_v24 }
 0x145   : > { %v658_v2 = vsel %vm594_vm5, %v548_v51, %v626_v58  ;;  %v489_v4 = vadd.f32 %v1603_v24, %v488_v59  ;;  %v1177_v5 = vpop.f32.mrf.mxu0  ;;  %v1193_v6 = vpop.f32.mrf.mxu1  ;;  %v1055_v7 = vpack.c.bf16 %v642_v1, %v641_v50  ;;  %vm592_vm7 = vcmp.gt.f32.partialorder %v540_v63, 0.0 }
 0x146   : > { %v1095_v8 = vpack.c.bf16 %v658_v2, %v657_v55  ;;  %v640_v9 = vsel %vm576_vm6, %v476_v52, %v608_v62  ;;  %v624_v11 = vmul.f32 0.2, %v540_v63  ;;  %v613_v12 = vmul.f32 0.2, %v497_v0 }
 0x147   : > { %v1050_v10 = vpack.c.bf16 %v640_v9, %v639_v56  ;;  %v655_v13 = vsel %vm591_vm3, %v537_v48, %v623_v61  ;;  %1111 = vst [vmem:[%s1618_s28 + $0x28] sm:$0xff] %v1055_v7   ;;  %vm581_vm8 = vcmp.gt.f32.partialorder %v497_v0, 0.0  ;;  %v629_v15 = vmul.f32 0.2, %v561_v3  ;;  %v491_v18 = vpop.f32.mrf.mxu0  ;;  %v555_v19 = vpop.f32.mrf.mxu1 }
 0x148   : > { %1119 = vst [vmem:[%s1618_s28 + $0x68] sm:$0xff] %v1095_v8   ;;  %v656_v14 = vsel %vm592_vm7, %v540_v63, %v624_v11  ;;  %v553_v16 = vadd.f32 %v1603_v24, %v552_v60  ;;  %v500_v17 = vadd.f32 %v1177_v5, %v1603_v24  ;;  %vm597_vm9 = vcmp.gt.f32.partialorder %v561_v3, 0.0 }
 0x149   : > { %1110 = vst [vmem:[%s1618_s28 + $0x20] sm:$0xff] %v1050_v10   ;;  %v1090_v20 = vpack.c.bf16 %v656_v14, %v655_v13  ;;  %vm579_vm10 = vcmp.gt.f32.partialorder %v489_v4, 0.0  ;;  %v564_v21 = vadd.f32 %v1193_v6, %v1603_v24  ;;  %v645_v22 = vsel %vm581_vm8, %v497_v0, %v613_v12 }
 0x14a   : > { %v611_v23 = vmul.f32 0.2, %v489_v4  ;;  %vm582_vm11 = vcmp.gt.f32.partialorder %v500_v17, 0.0  ;;  %v614_v25 = vmul.f32 0.2, %v500_v17  ;;  %v492_v27 = vadd.f32 %v1603_v24, %v491_v18 }
 0x14b   : > { %1118 = vst [vmem:[%s1618_s28 + $0x60] sm:$0xff] %v1090_v20   ;;  %vm598_vm12 = vcmp.gt.f32.partialorder %v564_v21, 0.0  ;;  %v630_v26 = vmul.f32 0.2, %v564_v21  ;;  %v556_v28 = vadd.f32 %v1603_v24, %v555_v19  ;;  %v661_v29 = vsel %vm597_vm9, %v561_v3, %v629_v15 }
 0x14c   : > { %vm595_vm13 = vcmp.gt.f32.partialorder %v553_v16, 0.0  ;;  %v627_v30 = vmul.f32 0.2, %v553_v16  ;;  %v646_v31 = vsel %vm582_vm11, %v500_v17, %v614_v25  ;;  %vm580_vm14 = vcmp.gt.f32.partialorder %v492_v27, 0.0 }
 0x14d   : > { %v1065_v32 = vpack.c.bf16 %v646_v31, %v645_v22  ;;  %v662_v33 = vsel %vm598_vm12, %v564_v21, %v630_v26  ;;  %v612_v34 = vmul.f32 0.2, %v492_v27  ;;  %vm596_vm15 = vcmp.gt.f32.partialorder %v556_v28, 0.0 }
 0x14e   : > { %v1105_v35 = vpack.c.bf16 %v662_v33, %v661_v29  ;;  %v628_v36 = vmul.f32 0.2, %v556_v28  ;;  %v643_v24 = vsel %vm579_vm10, %v489_v4, %v611_v23  ;;  %v659_v38 = vsel %vm595_vm13, %v553_v16, %v627_v30 }
 0x14f   : > { %1113 = vst [vmem:[%s1618_s28 + $0x38] sm:$0xff] %v1065_v32   ;;  %v644_v37 = vsel %vm580_vm14, %v492_v27, %v612_v34 }
 0x150   : > { %1121 = vst [vmem:[%s1618_s28 + $0x78] sm:$0xff] %v1105_v35   ;;  %v1060_v39 = vpack.c.bf16 %v644_v37, %v643_v24  ;;  %v660_v40 = vsel %vm596_vm15, %v556_v28, %v628_v36 }
 0x151   : > { %v1100_v41 = vpack.c.bf16 %v660_v40, %v659_v38 }
 0x152   : > { %1112 = vst [vmem:[%s1618_s28 + $0x30] sm:$0xff] %v1060_v39  }
 0x153   : > { %1120 = vst [vmem:[%s1618_s28 + $0x70] sm:$0xff] %v1100_v41  }
 0x154   : > { %1362 = shalt.err (!%p1359_p0)
}
 0x155   : > { %s1363_s11 = scalar_lea.hbm %s1665_s4, 2048  ;;  %s1367_s30 = scalar_lea.hbm %s1715_s3, 4096 }
 0x156   : > { %p1364_p5 = scmp.ne.s32.totalorder %s1665_s4, %s1363_s11  ;;  %p1368_p4 = scmp.lt.s32.totalorder %s1665_s4, %s1715_s3 }
 0x157   : > { %p1369_p6 = scmp.lt.s32.totalorder %s1367_s30, %s1363_s11 }
 0x158   : > { %p1365_p2 = pnand %p1364_p5, %p1731_p11 }
 0x159   : > { %p1370_p8 = por %p1369_p6, %p1368_p4 }
 0x15a   : > { %p1366_p1 = pneg %p1365_p2 }
 0x15c   : > { %p1371_p3 = pnand %p1370_p8, %p1366_p1 }
 0x15e   : > { %1374 = shalt.err (!%p1371_p3)
}
 0x15f   : > { %s1424_s20 = smov 64   ;;  %s1425_s28 = smov 4  }
 0x160   : > { %1216 = dma.vmem_to_hbm [thread:$0]  (%p1731_p11), %s1667_s17, 2048, %s1665_s4, %s824_s16, %s1424_s20, %s1424_s20, %s1425_s28  }
 0x161 PF: > { %s852_s29 = sand.u32 1, %s1405_s12   ;;  %p1732_p7 = scmp.ne.s32.totalorder %s1721_s19, 0 }
 0x162   : > { %p1733_p9 = scmp.ge.s32.totalorder %s1417_s15, 2  ;;  %s853_s22 = scalar_lea.sflag [#allocation4], %s852_s29 }
 0x164   : > { %p1227_p10 = pnand %p1733_p9, %p1732_p7 }
 0x166   : > { %p1228_p12 = pneg %p1227_p10 }
 0x168   : > { %1400 = dma.done.wait (%p1228_p12), %s853_s22, 2048  }
 0x169   : > { %1402 = vsyncadd (%p1228_p12), %s853_s22, 4294965248  ;;  %p17_p13 = scmp.ge.s32.totalorder %s1500_s24, 4   ;;  %s1734_s12 = smov %s1409_s13 }
 0x16a   : > { %s1735_s13 = smov %s1413_s14  ;;  %s1736_s14 = smov %s1520_s5 }
 0x16b   : > { %s1737_s15 = smov %s1500_s24  ;;  %19 = sbr.rel (!%p17_p13) target bundleno = 6 (0x6), region = 81 }
 0x170   :  { %858 = vsyncpa [#allocation3], 1 }
 0x171   :  { %860 = vsyncpa [#allocation3 + $0x1], 1 }
 0x172   :  { %861 = vsyncpa [#allocation6], 1 }
 0x173   :  { %862 = vsyncpa [#allocation4], 1 }
 0x174   :  { %864 = vsyncpa [#allocation4 + $0x1], 1 }

</bundles_post_ra>
